<compile_context>
chip_gen: v6e
topology: v6e:2x2x1
jax: 0.10.0
libtpu: 0.0.40
codegen_flags: <defaults>
</compile_context>

<pallas_src>
import jax
import jax.numpy as jnp
from jax.experimental import pallas as pl
from jax.experimental.pallas import tpu as pltpu


def _round_up(x, m):
    return ((x + m - 1) // m) * m


def mlp_kernel(x_ref, w1_ref, b1_ref, w2_ref, b2_ref, o_ref):
    # Cast x to bf16 in-kernel (no separate wrapper pass over x in HBM).
    x = x_ref[...].astype(jnp.bfloat16)
    # hidden = relu(x @ W1 + b1): bf16 MXU operands, f32 accumulation.
    h = jnp.dot(x, w1_ref[...], preferred_element_type=jnp.float32)
    # Epilogue in f32 (bias add + ReLU on the VPU; v5e-friendly).
    h = jnp.maximum(h + b1_ref[...], 0.0)
    # out = hidden @ W2 + b2: cast to bf16 only right before the second dot.
    o = jnp.dot(h.astype(jnp.bfloat16), w2_ref[...],
                preferred_element_type=jnp.float32)
    o_ref[...] = (o + b2_ref[...]).astype(o_ref.dtype)
    # TODO(synk): for very large n_hidden (>= ~2048), tile the hidden dim here
    # (loop over Hp chunks of W1 columns / W2 rows accumulating the (tb, O)
    # output) to cap the live f32 hidden intermediate.


def single_layer_net(x, w1, b1, w2, b2, *, max_tb=1024,
                     vmem_budget_bytes=32 << 20):
    """Forward pass of singleLayerNet.

    x  : (B, n_feature)         float32
    w1 : (n_feature, n_hidden)  float32   (PyTorch hidden.weight.T)
    b1 : (n_hidden,)            float32
    w2 : (n_hidden, n_output)   float32   (PyTorch predict.weight.T)
    b2 : (n_output,)            float32
    returns (B, n_output) float32
    """
    B, F = x.shape
    H = w1.shape[1]
    O = w2.shape[1]

    # Pad only the hidden dim to a lane-dense multiple of 128 (cheap: weights
    # are read once). x keeps its true feature width F and the output keeps
    # its true width O; full-extent blocks make those legal even when F, O are
    # not multiples of 128.
    Hp = _round_up(H, 128)

    # ---- VMEM accounting ----
    # Pallas double-buffers every input by default, so the grid-invariant
    # weights/biases cost 2x their size. Per-batch-row cost covers the
    # double-buffered f32 x tile, double-buffered f32 out tile, the f32 hidden
    # intermediate and the in-kernel bf16 casts.
    weight_bytes = 2 * (F * Hp * 2 + Hp * O * 2 + Hp * 4 + O * 4)
    per_row_bytes = 2 * F * 4 + 2 * O * 4 + Hp * 4 + F * 2 + Hp * 2
    if weight_bytes > (3 * vmem_budget_bytes) // 4:
        # TODO(synk): add a K-tiled fallback (grid axis over F with an f32
        # accumulator scratch + pl.when init/finalize) for very large layers.
        raise ValueError(
            "singleLayerNet weights do not fit the VMEM budget "
            f"(resident {weight_bytes} B vs budget {vmem_budget_bytes} B).")

    tb = max(16, (vmem_budget_bytes - weight_bytes) // max(per_row_bytes, 1))
    tb = min(int(tb), int(max_tb), _round_up(B, 16))
    # Give v7x's 2 TensorCores at least two batch tiles when B is big enough
    # (the batch grid axis is "parallel"); no effect on v5e/v6e (1 TC).
    if B >= 32:
        tb = min(tb, _round_up(pl.cdiv(B, 2), 16))
    # MXU M granularity: multiples of 256 suit the v6e/v7x 256x256 arrays and
    # are also multiples of v5e's 128; never drop below 16 (bf16 sublanes).
    if tb >= 256:
        tb = (tb // 256) * 256
    elif tb >= 128:
        tb = 128
    else:
        tb = max(16, (tb // 16) * 16)

    Bp = _round_up(max(B, tb), tb)  # pad batch so every tile is full

    # Wrapper-side prep: batch pad only if needed; weights cast to bf16 once
    # (tiny, read-once arrays); biases stay f32 for the VPU epilogue.
    xp = x if Bp == B else jnp.pad(x, ((0, Bp - B), (0, 0)))
    w1p = (w1 if Hp == H else jnp.pad(w1, ((0, 0), (0, Hp - H)))).astype(jnp.bfloat16)
    w2p = (w2 if Hp == H else jnp.pad(w2, ((0, Hp - H), (0, 0)))).astype(jnp.bfloat16)
    b1p = (b1 if Hp == H else jnp.pad(b1, (0, Hp - H))).reshape(1, Hp).astype(jnp.float32)
    b2p = b2.reshape(1, O).astype(jnp.float32)

    cost = pl.CostEstimate(
        flops=2 * Bp * F * Hp + 2 * Bp * Hp * O,
        transcendentals=0,
        bytes_accessed=(Bp * F * 4 + F * Hp * 2 + Hp * O * 2
                        + Hp * 4 + O * 4 + Bp * O * 4),
    )

    vmem_limit = min(int(vmem_budget_bytes * 1.2), 100 << 20)

    out_padded = pl.pallas_call(
        mlp_kernel,
        out_shape=jax.ShapeDtypeStruct((Bp, O), jnp.float32),
        grid_spec=pl.GridSpec(
            grid=(Bp // tb,),
            in_specs=[
                pl.BlockSpec((tb, F), lambda i: (i, 0)),   # x tile, pipelined
                pl.BlockSpec((F, Hp), lambda i: (0, 0)),   # W1 resident
                pl.BlockSpec((1, Hp), lambda i: (0, 0)),   # b1 resident
                pl.BlockSpec((Hp, O), lambda i: (0, 0)),   # W2 resident
                pl.BlockSpec((1, O), lambda i: (0, 0)),    # b2 resident
            ],
            out_specs=pl.BlockSpec((tb, O), lambda i: (i, 0)),
        ),
        compiler_params=pltpu.CompilerParams(
            dimension_semantics=("parallel",),   # shard batch over v7x's 2 TCs
            vmem_limit_bytes=vmem_limit,
        ),
        cost_estimate=cost,
    )(xp, w1p, b1p, w2p, b2p)

    return out_padded if Bp == B else out_padded[:B]


if __name__ == "__main__":
    # Small shapes consistent with the module's forward: (batch, n_feature).
    batch, n_feature, n_hidden, n_output = 8, 32, 64, 16

    key = jax.random.PRNGKey(0)
    kx, kw1, kb1, kw2, kb2 = jax.random.split(key, 5)

    x = jax.random.normal(kx, (batch, n_feature), dtype=jnp.float32)

    # Deterministic init mimicking nn.Linear's uniform(-1/sqrt(in), 1/sqrt(in)),
    # stored directly in (in, out) layout = PyTorch weight transposed.
    bound1 = 1.0 / jnp.sqrt(jnp.float32(n_feature))
    bound2 = 1.0 / jnp.sqrt(jnp.float32(n_hidden))
    w1 = jax.random.uniform(kw1, (n_feature, n_hidden), jnp.float32, -bound1, bound1)
    b1 = jax.random.uniform(kb1, (n_hidden,), jnp.float32, -bound1, bound1)
    w2 = jax.random.uniform(kw2, (n_hidden, n_output), jnp.float32, -bound2, bound2)
    b2 = jax.random.uniform(kb2, (n_output,), jnp.float32, -bound2, bound2)

    out = single_layer_net(x, w1, b1, w2, b2)
    out = jax.block_until_ready(out)
    assert out.shape == (batch, n_output)

    # Reference 1: mirrors the kernel arithmetic (bf16 MXU inputs, f32 accum).
    h_ref = jnp.maximum(
        jnp.dot(x.astype(jnp.bfloat16), w1.astype(jnp.bfloat16),
                preferred_element_type=jnp.float32) + b1, 0.0)
    ref_bf16 = jnp.dot(h_ref.astype(jnp.bfloat16), w2.astype(jnp.bfloat16),
                       preferred_element_type=jnp.float32) + b2
    assert jnp.allclose(out, ref_bf16, atol=1e-3, rtol=1e-3)

    # Reference 2: pure f32 math (loose tolerance for the bf16 MXU inputs).
    ref_f32 = jnp.maximum(x @ w1 + b1, 0.0) @ w2 + b2
    assert jnp.allclose(out, ref_f32, atol=5e-2, rtol=5e-2)

    print("KERNEL_OK")
</pallas_src>

<mosaic_0001>
module attributes {stable_mosaic.version = 11 : i64} {
  func.func @mlp_kernel(%arg0: i32, %arg1: memref<16x32xf32, #tpu.memory_space<vmem>>, %arg2: memref<32x128xbf16, #tpu.memory_space<vmem>>, %arg3: memref<1x128xf32, #tpu.memory_space<vmem>>, %arg4: memref<128x16xbf16, #tpu.memory_space<vmem>>, %arg5: memref<1x16xf32, #tpu.memory_space<vmem>>, %arg6: memref<16x16xf32, #tpu.memory_space<vmem>>) attributes {dimension_semantics = [#tpu.dimension_semantics<parallel>], iteration_bounds = array<i64: 1>, scalar_prefetch = 0 : i64, scratch_operands = 0 : i64, tpu.core_type = #tpu.core_type<tc>, window_params = [{transform_indices = @transform_0, window_bounds = array<i64: 16, 32>}, {pipeline_mode = #tpu.pipeline_mode<synchronous>, transform_indices = @transform_1, window_bounds = array<i64: 32, 128>}, {pipeline_mode = #tpu.pipeline_mode<synchronous>, transform_indices = @transform_2, window_bounds = array<i64: 1, 128>}, {pipeline_mode = #tpu.pipeline_mode<synchronous>, transform_indices = @transform_3, window_bounds = array<i64: 128, 16>}, {pipeline_mode = #tpu.pipeline_mode<synchronous>, transform_indices = @transform_4, window_bounds = array<i64: 1, 16>}, {transform_indices = @transform_5, window_bounds = array<i64: 16, 16>}]} {
    %c0 = arith.constant 0 : index
    %c0_0 = arith.constant 0 : index
    %0 = vector.load %arg1[%c0, %c0_0] : memref<16x32xf32, #tpu.memory_space<vmem>>, vector<16x32xf32>
    %1 = arith.truncf %0 : vector<16x32xf32> to vector<16x32xbf16>
    %c0_1 = arith.constant 0 : index
    %c0_2 = arith.constant 0 : index
    %2 = vector.load %arg2[%c0_1, %c0_2] : memref<32x128xbf16, #tpu.memory_space<vmem>>, vector<32x128xbf16>
    %cst = arith.constant dense<0.000000e+00> : vector<16x128xf32>
    %3 = tpu.matmul %1, %2, %cst {dimension_numbers = #tpu.dot_dimension_numbers<[1], [0], [0], [1], [0, 0, 1, 1], [], []>} : vector<16x32xbf16>, vector<32x128xbf16>, vector<16x128xf32> -> vector<16x128xf32>
    %c0_3 = arith.constant 0 : index
    %c0_4 = arith.constant 0 : index
    %4 = vector.load %arg3[%c0_3, %c0_4] : memref<1x128xf32, #tpu.memory_space<vmem>>, vector<1x128xf32>
    %5 = vector.broadcast %4 : vector<1x128xf32> to vector<16x128xf32>
    %6 = arith.addf %3, %5 : vector<16x128xf32>
    %cst_5 = arith.constant 0.000000e+00 : f32
    %7 = vector.broadcast %cst_5 : f32 to vector<16x128xf32>
    %8 = arith.maximumf %6, %7 : vector<16x128xf32>
    %9 = arith.truncf %8 : vector<16x128xf32> to vector<16x128xbf16>
    %c0_6 = arith.constant 0 : index
    %c0_7 = arith.constant 0 : index
    %10 = vector.load %arg4[%c0_6, %c0_7] : memref<128x16xbf16, #tpu.memory_space<vmem>>, vector<128x16xbf16>
    %cst_8 = arith.constant dense<0.000000e+00> : vector<16x16xf32>
    %11 = tpu.matmul %9, %10, %cst_8 {dimension_numbers = #tpu.dot_dimension_numbers<[1], [0], [0], [1], [0, 0, 1, 1], [], []>} : vector<16x128xbf16>, vector<128x16xbf16>, vector<16x16xf32> -> vector<16x16xf32>
    %c0_9 = arith.constant 0 : index
    %c0_10 = arith.constant 0 : index
    %12 = vector.load %arg5[%c0_9, %c0_10] : memref<1x16xf32, #tpu.memory_space<vmem>>, vector<1x16xf32>
    %13 = vector.broadcast %12 : vector<1x16xf32> to vector<16x16xf32>
    %14 = arith.addf %11, %13 : vector<16x16xf32>
    %c0_11 = arith.constant 0 : index
    %c0_12 = arith.constant 0 : index
    %15 = vector.load %arg6[%c0_11, %c0_12] : memref<16x16xf32, #tpu.memory_space<vmem>>, vector<16x16xf32>
    tpu.vector_store %arg6[%c0_11, %c0_12], %14 {strides = array<i32>} : memref<16x16xf32, #tpu.memory_space<vmem>>, vector<16x16xf32>,
    return
  }
  func.func @transform_0(%arg0: i32) -> (i32, i32) {
    %c0_i32 = arith.constant 0 : i32
    %c0_i32_0 = arith.constant 0 : i32
    return %arg0, %c0_i32 : i32, i32
  }
  func.func @transform_1(%arg0: i32) -> (i32, i32) {
    %c0_i32 = arith.constant 0 : i32
    %c0_i32_0 = arith.constant 0 : i32
    %c0_i32_1 = arith.constant 0 : i32
    return %c0_i32, %c0_i32_0 : i32, i32
  }
  func.func @transform_2(%arg0: i32) -> (i32, i32) {
    %c0_i32 = arith.constant 0 : i32
    %c0_i32_0 = arith.constant 0 : i32
    %c0_i32_1 = arith.constant 0 : i32
    return %c0_i32, %c0_i32_0 : i32, i32
  }
  func.func @transform_3(%arg0: i32) -> (i32, i32) {
    %c0_i32 = arith.constant 0 : i32
    %c0_i32_0 = arith.constant 0 : i32
    %c0_i32_1 = arith.constant 0 : i32
    return %c0_i32, %c0_i32_0 : i32, i32
  }
  func.func @transform_4(%arg0: i32) -> (i32, i32) {
    %c0_i32 = arith.constant 0 : i32
    %c0_i32_0 = arith.constant 0 : i32
    %c0_i32_1 = arith.constant 0 : i32
    return %c0_i32, %c0_i32_0 : i32, i32
  }
  func.func @transform_5(%arg0: i32) -> (i32, i32) {
    %c0_i32 = arith.constant 0 : i32
    %c0_i32_0 = arith.constant 0 : i32
    return %arg0, %c0_i32 : i32, i32
  }
}

</mosaic_0001>

<bundles_post_ra>
// kernel: tpu_custom_call.1
= control target key start
LH: loop header
LB: loop body
LE: loop exit
PB: predicated region body
PF: predicated region fallthrough
CT: control target
= control target key end

     0   :  { %v317_v1 = vmov 0.0   ;;  %vm318_vm0 = vmmov 0   ;;  %vm48_vm1 = vcmask 261120   ;;  %s397_s0 = inlined_call_operand.vmem [shape: f32[16,32], index: 0, kind: input, shape index: {}]   ;;  %s398_s1 = inlined_call_operand.vmem [shape: bf16[32,128], index: 1, kind: input, shape index: {}]   ;;  %s399_s2 = inlined_call_operand.vmem [shape: f32[1,128], index: 2, kind: input, shape index: {}]   ;;  %s400_s3 = inlined_call_operand.vmem [shape: bf16[128,16], index: 3, kind: input, shape index: {}]   ;;  %s401_s4 = inlined_call_operand.vmem [shape: f32[1,16], index: 4, kind: input, shape index: {}]   ;;  %s402_s5 = inlined_call_operand.hbm [shape: f32[16,16], index: 5, kind: output, shape index: {}]  }
   0x1   :  { %v285_v0 = vld [vmem:[%s398_s1 + $0x8] sm:$0xff]   ;;  %252 = vmatprep.subr.bf16.mxu0 %v317_v1  ;;  %v286_v2 = vld [vmem:[%s398_s1] sm:$0xff]   ;;  %260 = vmatprep.subr.bf16.mxu1 %v317_v1  ;;  %v287_v5 = vld [vmem:[%s400_s3 + $0x38] sm:$0xff]  }
   0x2   :  { %253 = vmatpush3.bf16.msra.mxu0 %v285_v0  ;;  %256 = vmatprep.mubr.msk.bf16.mxu0 %vm318_vm0, %v317_v1  ;;  %v22_v3 = vld [vmem:[%s397_s0] sm:$0xff]  ;;  %v23_v4 = vld [vmem:[%s397_s0 + $0x8] sm:$0xff]  ;;  %v288_v7 = vld [vmem:[%s400_s3 + $0x30] sm:$0xff]  }
   0x3   :  { %254 = vmatprep.subr.bf16.mxu0 %v317_v1  ;;  %276 = vmatprep.mubr.msk.bf16.mxu1 %vm318_vm0, %v317_v1  ;;  %v24_v6 = vpack.c.bf16 %v23_v4, %v22_v3  ;;  %v289_v8 = vld [vmem:[%s400_s3 + $0x28] sm:$0xff]  }
   0x4   :  { %261 = vmatpush3.bf16.msra.mxu1 %v287_v5 }
   0x5   :  { %262 = vmatprep.subr.bf16.mxu1 %v317_v1 }
   0x6   :  { %255 = vmatpush3.bf16.msra.mxu0 %v286_v2 }
   0x8   :  { %263 = vmatpush3.bf16.msra.mxu1 %v288_v7 }
   0x9   :  { %257 = vmatmul.mubr.msk.bf16.vlgmr.msra.gmra.mxu0 %vm48_vm1, %v24_v6  ;;  %264 = vmatprep.subr.bf16.mxu1 %v317_v1 }
   0xa   :  { %10 = vsyncpa [#allocation3], 0  ;;  %v290_v9 = vld [vmem:[%s400_s3 + $0x20] sm:$0xff]   ;;  %v291_v10 = vld [vmem:[%s400_s3 + $0x18] sm:$0xff]   ;;  %vm208_vm2 = vcmask 130048  }
   0xb   :  { %v292_v11 = vld [vmem:[%s400_s3 + $0x10] sm:$0xff]   ;;  %v293_v12 = vld [vmem:[%s400_s3 + $0x8] sm:$0xff]   ;;  %v294_v13 = vld [vmem:[%s400_s3] sm:$0xff]   ;;  %s319_s3 = smov [#allocation2]  }
   0xc   :  { %265 = vmatpush3.bf16.msra.mxu1 %v289_v8  ;;  %v227_v14 = vld [vmem:[%s399_s2] ss:$0 sm:$0xff]  ;;  %s216_s19 = sshll.u32 %s319_s3, 4  ;;  %s217_s19 = int_to_ptr.vmem [resolvable:$true] %s216_s19 }
   0xd   :  { %266 = vmatprep.subr.bf16.mxu1 %v317_v1  ;;  %v231_v24 = vld [vmem:[%s401_s4] ss:$0 sm:$0xff]  ;;  %s295_s2 = scalar_lea.vmem %s217_s19, 256  ;;  %p300_p1 = scmp.lt.s32.totalorder %s217_s19, %s217_s19 }
   0xe   :  { %p296_p0 = scmp.ne.s32.totalorder %s217_s19, %s295_s2  ;;  %p301_p2 = scmp.lt.s32.totalorder %s295_s2, %s295_s2 }
  0x10   :  { %267 = vmatpush3.bf16.msra.mxu1 %v290_v9  ;;  %p302_p3 = por %p301_p2, %p300_p1 }
  0x11   :  { %268 = vmatprep.subr.bf16.mxu1 %v317_v1 }
  0x12   :  { %p303_p4 = pnand %p302_p3, %p296_p0 }
  0x14   :  { %269 = vmatpush3.bf16.msra.mxu1 %v291_v10 }
  0x15   :  { %270 = vmatprep.subr.bf16.mxu1 %v317_v1 }
  0x18   :  { %271 = vmatpush3.bf16.msra.mxu1 %v292_v11 }
  0x19   :  { %272 = vmatprep.subr.bf16.mxu1 %v317_v1 }
  0x1c   :  { %273 = vmatpush3.bf16.msra.mxu1 %v293_v12 }
  0x1d   :  { %274 = vmatprep.subr.bf16.mxu1 %v317_v1 }
  0x20   :  { %275 = vmatpush3.bf16.msra.mxu1 %v294_v13 }
  0xc9   :  { %v86_v15 = vpop.f32.mrf.mxu0 }
  0xca   :  { %v87_v17 = vadd.f32 %v227_v14, %v86_v15 }
  0xcb   :  { %v258_v16 = vpop.f32.mrf.mxu0 }
  0xcc   :  { %v93_v21 = vmax.f32 %v87_v17, 0.0 }
  0xcd   :  { %v89_v18 = vpop.f32.mrf.mxu0 }
  0xce   :  { %v90_v19 = vadd.f32 %v227_v14, %v89_v18 }
  0xcf   :  { %v259_v20 = vpop.f32.mrf.mxu0 }
  0xd0   :  { %v94_v22 = vmax.f32 %v90_v19, 0.0 }
  0xd2   :  { %v95_v23 = vpack.c.bf16 %v94_v22, %v93_v21 }
  0xd4   :  { %277 = vmatmul.mubr.bf16.vlgmr.msra.gmra.mxu1 %v95_v23 }
 0x194   :  { %v201_v25 = vpop.f32.mrf.mxu1 }
 0x195   :  { %v202_v26 = vadd.f32 %v231_v24, %v201_v25 }
 0x196   :  { %v278_v27 = vpop.f32.mrf.mxu1 }
 0x197   :  { %209 = vst.msk [vmem:[#allocation2] sm:$0xff] %vm208_vm2, %v202_v26 }
 0x198   :  { %v204_v28 = vpop.f32.mrf.mxu1 }
 0x199   :  { %v205_v29 = vadd.f32 %v231_v24, %v204_v28 }
 0x19a   :  { %v279_v30 = vpop.f32.mrf.mxu1 }
 0x19b   :  { %210 = vst.msk [vmem:[#allocation2 + $0x8] sm:$0xff] %vm208_vm2, %v205_v29 }
 0x19c   :  { %306 = shalt.err (!%p303_p4)
}
 0x19d   :  { %s320_s4 = smov 128   ;;  %s321_s20 = smov 8  }
 0x19e   :  { %222 = dma.vmem_to_hbm [thread:$0]  %s217_s19, 256, %s402_s5, [#allocation3], %s320_s4, %s320_s4, %s321_s20  }
 0x19f   :  { %315 = dma.done.wait [#allocation3], 256  }
 0x1a0   :  { %316 = vsyncadd [#allocation3], 4294967040 }
 0x1a1   :  { %226 = vsyncpa [#allocation3], 1 }

</bundles_post_ra>
